<compile_context>
chip_gen: v7x
topology: tpu7x:2x2x1
jax: 0.10.0
libtpu: 0.0.40
codegen_flags: <defaults>
</compile_context>

<pallas_src>
import jax
import jax.numpy as jnp
from jax.experimental import pallas as pl
from jax.experimental.pallas import tpu as pltpu

# ----------------------------- configuration -------------------------------
VOCAB    = 8          # vocab_size
DEPTH    = 3          # number of WaveNet blocks (dilations 1, 2, 4)
CONV_DIM = 8          # conv_dim (must be even for the gated unit)
C2       = CONV_DIM // 2
RES_DIM  = 4          # residual_dim (embedding dim)
SKIP_DIM = 4          # skip_dim
HEAD_DIM = 4          # head_dim
BATCH    = 2
SEQ      = 16

BS   = BATCH * SEQ          # flattened rows (batch folded into sublanes)
RS   = RES_DIM + SKIP_DIM   # fused state width: [residual | skip_sum]
LANE = 128                  # lane-dense slab / output width

# --------------------- packed-slab row layout (8-aligned) -------------------
IDS   = 0                                  # rows 0..31, col 0: bitcast ids
EMB   = IDS + ((BS + 7) // 8) * 8          # 32: (VOCAB, RS); skip half = 0
DCC0  = EMB + ((VOCAB + 7) // 8) * 8       # 40: per depth, tap on x[t-dil]
DCC1  = DCC0 + 8 * DEPTH                   # 64: per depth, tap on x[t]
WRS   = DCC1 + 8 * DEPTH                   # 88: per depth [wrs(4); brs(1); pad]
HEADW = WRS + 8 * DEPTH                    # 112: [c1w(4); c1b(1); pad]
LOGW  = HEADW + 8                          # 120: [lw(4, 128 lanes); lb(1); pad]
SLAB_ROWS = LOGW + 8                       # 128


# ------------------------------- kernel ------------------------------------
def wavenet_kernel(slab_ref, out_ref):
    bf16 = jnp.bfloat16

    # Embedding lookup as a one-hot matmul. Token ids live bitcast int32->f32
    # in column 0 of the slab; bitcast back is a pure reinterpretation.
    ids = pltpu.bitcast(slab_ref[IDS:IDS + BS, 0:1], jnp.int32)        # (BS,1)
    onehot = (jax.lax.broadcasted_iota(jnp.int32, (BS, VOCAB), 1) == ids
              ).astype(bf16)                                           # (BS,V)
    emb = slab_ref[EMB:EMB + VOCAB, :RS].astype(bf16)                  # (V,RS)
    # state cols [0:RES_DIM] = residual x, cols [RES_DIM:RS] = skip sum (=0).
    state = jnp.dot(onehot, emb, preferred_element_type=jnp.float32)   # (BS,RS)

    # Per-sequence position (batch folded into the row axis), hoisted once.
    pos = jax.lax.broadcasted_iota(jnp.int32, (BS, RES_DIM), 0) % SEQ

    for d in range(DEPTH):                                             # unrolled
        dil = 2 ** d
        x = state[:, :RES_DIM]
        # Causal shift over the flattened batch*seq rows; the mask zeroes both
        # the t < dil pad region and cross-sequence wraparound of the roll.
        x_shift = jnp.where(pos >= dil, pltpu.roll(x, shift=dil, axis=0), 0.0)

        w0 = slab_ref[DCC0 + 8 * d:DCC0 + 8 * d + RES_DIM, :CONV_DIM].astype(bf16)
        w1 = slab_ref[DCC1 + 8 * d:DCC1 + 8 * d + RES_DIM, :CONV_DIM].astype(bf16)
        # Dilated causal conv: two independent K=4 taps (no concat, so the two
        # MXU pushes are not serialized behind a lane-placement op).
        pre = (jnp.dot(x_shift.astype(bf16), w0,
                       preferred_element_type=jnp.float32)
               + jnp.dot(x.astype(bf16), w1,
                         preferred_element_type=jnp.float32))          # (BS,CONV)

        # Gated tanh unit (GatedLinearUnit with activation_fn=tanh).
        glu = jnp.tanh(pre[:, :C2]) * jax.nn.sigmoid(pre[:, C2:])      # (BS,C2)

        # Fused residual + skip 1x1 convs: output halves are lane-aligned with
        # the state halves, so a single add updates x and skip_sum together.
        wrs = slab_ref[WRS + 8 * d:WRS + 8 * d + C2, :RS].astype(bf16)
        brs = slab_ref[WRS + 8 * d + C2:WRS + 8 * d + C2 + 1, :RS]
        state = (state
                 + jnp.dot(glu.astype(bf16), wrs,
                           preferred_element_type=jnp.float32)
                 + brs)

    # Head: relu -> conv1 (1x1) -> relu -> logits (padded to 128 lanes).
    h = jnp.maximum(state[:, RES_DIM:RS], 0.0)                         # skip sum
    c1w = slab_ref[HEADW:HEADW + SKIP_DIM, :HEAD_DIM].astype(bf16)
    c1b = slab_ref[HEADW + SKIP_DIM:HEADW + SKIP_DIM + 1, :HEAD_DIM]
    h = jnp.maximum(
        jnp.dot(h.astype(bf16), c1w, preferred_element_type=jnp.float32) + c1b,
        0.0)                                                           # (BS,H)
    lw = slab_ref[LOGW:LOGW + HEAD_DIM, :].astype(bf16)
    lb = slab_ref[LOGW + HEAD_DIM:LOGW + HEAD_DIM + 1, :]
    out_ref[...] = (jnp.dot(h.astype(bf16), lw,
                            preferred_element_type=jnp.float32)
                    + lb)                                              # (BS,128)


# ------------------------------ slab packing --------------------------------
def pack_inputs(seq_ids, p):
    """Build the single (SLAB_ROWS, 128) f32 input slab (ids + all weights)."""
    slab = jnp.zeros((SLAB_ROWS, LANE), jnp.float32)

    # Token ids, bitcast int32 -> f32 (pure bit reinterpretation; DMA-safe).
    ids_f32 = jax.lax.bitcast_convert_type(
        seq_ids.reshape(BS).astype(jnp.int32), jnp.float32)
    slab = slab.at[IDS:IDS + BS, 0].set(ids_f32)

    # Embedding: skip half of the fused state starts at zero.
    slab = slab.at[EMB:EMB + VOCAB, :RES_DIM].set(p["emb"])

    for d in range(DEPTH):
        slab = slab.at[DCC0 + 8 * d:DCC0 + 8 * d + RES_DIM, :CONV_DIM].set(p["dcc_w0"][d])
        slab = slab.at[DCC1 + 8 * d:DCC1 + 8 * d + RES_DIM, :CONV_DIM].set(p["dcc_w1"][d])
        # Fused residual|skip 1x1 conv, halves lane-aligned with the state.
        slab = slab.at[WRS + 8 * d:WRS + 8 * d + C2, :RES_DIM].set(p["res_w"][d])
        slab = slab.at[WRS + 8 * d:WRS + 8 * d + C2, RES_DIM:RS].set(p["skip_w"][d])
        slab = slab.at[WRS + 8 * d + C2, :RES_DIM].set(p["res_b"][d, 0])
        slab = slab.at[WRS + 8 * d + C2, RES_DIM:RS].set(p["skip_b"][d, 0])

    slab = slab.at[HEADW:HEADW + SKIP_DIM, :HEAD_DIM].set(p["conv1_w"])
    slab = slab.at[HEADW + SKIP_DIM, :HEAD_DIM].set(p["conv1_b"][0])

    # Logits padded to 128 output lanes for an unmasked final store.
    slab = slab.at[LOGW:LOGW + HEAD_DIM, :VOCAB].set(p["logits_w"])
    slab = slab.at[LOGW + HEAD_DIM, :VOCAB].set(p["logits_b"][0])
    return slab


# ------------------------------- wrapper ------------------------------------
def wavenet_forward(seq_ids, params):
    slab = pack_inputs(seq_ids, params)
    out = pl.pallas_call(
        wavenet_kernel,
        out_shape=jax.ShapeDtypeStruct((BS, LANE), jnp.float32),
        # Single invocation (grid=()): one slab DMA in, one lane-dense slab out;
        # all weights stay resident in VMEM for the whole forward pass.
        in_specs=[pl.BlockSpec((SLAB_ROWS, LANE), lambda: (0, 0))],
        out_specs=pl.BlockSpec((BS, LANE), lambda: (0, 0)),
    )(slab)
    return out.reshape(BATCH, SEQ, LANE)[..., :VOCAB]


# -------------------------- deterministic params ----------------------------
def init_params(key):
    # Weights stored pre-transposed for channel-last matmuls:
    #   torch Conv1d weight [out, in, k] -> here [in, out] per tap.
    keys = jax.random.split(key, 11)

    def nrm(k, shape, scale=0.25):
        return scale * jax.random.normal(k, shape, jnp.float32)

    return dict(
        emb=nrm(keys[0], (VOCAB, RES_DIM)),
        dcc_w0=nrm(keys[1], (DEPTH, RES_DIM, CONV_DIM)),
        dcc_w1=nrm(keys[2], (DEPTH, RES_DIM, CONV_DIM)),
        res_w=nrm(keys[3], (DEPTH, C2, RES_DIM)),
        res_b=nrm(keys[4], (DEPTH, 1, RES_DIM)),
        skip_w=nrm(keys[5], (DEPTH, C2, SKIP_DIM)),
        skip_b=nrm(keys[6], (DEPTH, 1, SKIP_DIM)),
        conv1_w=nrm(keys[7], (SKIP_DIM, HEAD_DIM)),
        conv1_b=nrm(keys[8], (1, HEAD_DIM)),
        logits_w=nrm(keys[9], (HEAD_DIM, VOCAB)),
        logits_b=nrm(keys[10], (1, VOCAB)),
    )


# ----------------------- plain-JAX reference (check) ------------------------
def wavenet_ref(ids, p):
    x = p["emb"][ids]                                       # (B, S, R)
    skip_sum = jnp.zeros((BATCH, SEQ, SKIP_DIM), jnp.float32)
    for d in range(DEPTH):
        dil = 2 ** d
        x_shift = jnp.pad(x, ((0, 0), (dil, 0), (0, 0)))[:, :SEQ, :]
        pre = (jnp.einsum("bsr,rc->bsc", x_shift, p["dcc_w0"][d])
               + jnp.einsum("bsr,rc->bsc", x, p["dcc_w1"][d]))
        glu = jnp.tanh(pre[..., :C2]) * jax.nn.sigmoid(pre[..., C2:])
        x = x + jnp.einsum("bsc,cr->bsr", glu, p["res_w"][d]) + p["res_b"][d]
        skip_sum = (skip_sum
                    + jnp.einsum("bsc,ck->bsk", glu, p["skip_w"][d])
                    + p["skip_b"][d])
    h = jnp.maximum(skip_sum, 0.0)
    h = jnp.maximum(jnp.einsum("bsk,kh->bsh", h, p["conv1_w"]) + p["conv1_b"],
                    0.0)
    return jnp.einsum("bsh,hv->bsv", h, p["logits_w"]) + p["logits_b"]


# --------------------------------- main --------------------------------------
if __name__ == "__main__":
    key = jax.random.PRNGKey(0)
    pkey, ikey = jax.random.split(key)
    params = init_params(pkey)
    seq_ids = jax.random.randint(ikey, (BATCH, SEQ), 0, VOCAB, dtype=jnp.int32)

    out = wavenet_forward(seq_ids, params)
    out = jax.block_until_ready(out)

    ref = wavenet_ref(seq_ids, params)
    assert out.shape == (BATCH, SEQ, VOCAB), out.shape
    # bf16 matmul operands (f32 accumulation) vs. the pure-f32 reference:
    # tolerance loosened per the performance review.
    max_err = float(jnp.max(jnp.abs(out - ref)))
    assert jnp.allclose(out, ref, atol=5e-2, rtol=5e-2), max_err

    print("KERNEL_OK")
</pallas_src>

<mosaic_0001>
module attributes {stable_mosaic.version = 11 : i64} {
  func.func @wavenet_kernel(%arg0: memref<128x128xf32, #tpu.memory_space<vmem>>, %arg1: memref<32x128xf32, #tpu.memory_space<vmem>>) attributes {dimension_semantics = [], scalar_prefetch = 0 : i64, scratch_operands = 0 : i64, tpu.core_type = #tpu.core_type<tc>} {
    %c0 = arith.constant 0 : index
    %c0_0 = arith.constant 0 : index
    %0 = vector.load %arg0[%c0, %c0_0] : memref<128x128xf32, #tpu.memory_space<vmem>>, vector<32x1xf32>
    %1 = tpu.bitcast %0 : vector<32x1xf32> -> vector<32x1xi32>
    %2 = tpu.iota {dimensions = array<i32: 1>} : vector<32x8xi32>
    %3 = vector.broadcast %1 : vector<32x1xi32> to vector<32x8xi32>
    %4 = arith.cmpi eq, %2, %3 : vector<32x8xi32>
    %5 = arith.extui %4 : vector<32x8xi1> to vector<32x8xi32>
    %6 = arith.sitofp %5 : vector<32x8xi32> to vector<32x8xf32>
    %7 = arith.truncf %6 : vector<32x8xf32> to vector<32x8xbf16>
    %c32 = arith.constant 32 : index
    %c0_1 = arith.constant 0 : index
    %8 = vector.load %arg0[%c32, %c0_1] : memref<128x128xf32, #tpu.memory_space<vmem>>, vector<8x8xf32>
    %9 = arith.truncf %8 : vector<8x8xf32> to vector<8x8xbf16>
    %cst = arith.constant dense<0.000000e+00> : vector<32x8xf32>
    %10 = tpu.matmul %7, %9, %cst {dimension_numbers = #tpu.dot_dimension_numbers<[1], [0], [0], [1], [0, 0, 1, 1], [], []>} : vector<32x8xbf16>, vector<8x8xbf16>, vector<32x8xf32> -> vector<32x8xf32>
    %11 = tpu.iota {dimensions = array<i32: 0>} : vector<32x4xi32>
    %c16_i32 = arith.constant 16 : i32
    %c0_i32 = arith.constant 0 : i32
    %12 = arith.cmpi eq, %c16_i32, %c0_i32 : i32
    %c1_i32 = arith.constant 1 : i32
    %13 = arith.select %12, %c1_i32, %c16_i32 : i32
    %14 = vector.broadcast %13 : i32 to vector<32x4xi32>
    %15 = arith.remsi %11, %14 : vector<32x4xi32>
    %c0_i32_2 = arith.constant 0 : i32
    %16 = vector.broadcast %c0_i32_2 : i32 to vector<32x4xi32>
    %17 = arith.cmpi ne, %15, %16 : vector<32x4xi32>
    %c0_i32_3 = arith.constant 0 : i32
    %18 = vector.broadcast %c0_i32_3 : i32 to vector<32x4xi32>
    %19 = arith.cmpi slt, %15, %18 : vector<32x4xi32>
    %c0_i32_4 = arith.constant 0 : i32
    %20 = arith.cmpi slt, %13, %c0_i32_4 : i32
    %21 = vector.broadcast %20 : i1 to vector<32x4xi1>
    %22 = vector.broadcast %21 : vector<32x4xi1> to vector<32x4xi1>
    %23 = arith.xori %19, %22 : vector<32x4xi1>
    %24 = arith.andi %23, %17 : vector<32x4xi1>
    %25 = vector.broadcast %13 : i32 to vector<32x4xi32>
    %26 = arith.addi %15, %25 : vector<32x4xi32>
    %27 = arith.select %24, %26, %15 : vector<32x4xi1>, vector<32x4xi32>
    %28 = vector.extract_strided_slice %10 {offsets = [0, 0], sizes = [32, 4], strides = [1, 1]} : vector<32x8xf32> to vector<32x4xf32>
    %c1_i32_5 = arith.constant 1 : i32
    %29 = vector.broadcast %c1_i32_5 : i32 to vector<32x4xi32>
    %30 = arith.cmpi sge, %27, %29 : vector<32x4xi32>
    %c1_i32_6 = arith.constant 1 : i32
    %31 = tpu.dynamic_rotate %28 by %c1_i32_6 dim 0 : vector<32x4xf32>, i32 -> vector<32x4xf32>
    %cst_7 = arith.constant 0.000000e+00 : f32
    %32 = vector.broadcast %cst_7 : f32 to vector<32x4xf32>
    %33 = arith.select %30, %31, %32 : vector<32x4xi1>, vector<32x4xf32>
    %c40 = arith.constant 40 : index
    %c0_8 = arith.constant 0 : index
    %34 = vector.load %arg0[%c40, %c0_8] : memref<128x128xf32, #tpu.memory_space<vmem>>, vector<4x8xf32>
    %35 = arith.truncf %34 : vector<4x8xf32> to vector<4x8xbf16>
    %c64 = arith.constant 64 : index
    %c0_9 = arith.constant 0 : index
    %36 = vector.load %arg0[%c64, %c0_9] : memref<128x128xf32, #tpu.memory_space<vmem>>, vector<4x8xf32>
    %37 = arith.truncf %36 : vector<4x8xf32> to vector<4x8xbf16>
    %38 = arith.truncf %33 : vector<32x4xf32> to vector<32x4xbf16>
    %cst_10 = arith.constant dense<0.000000e+00> : vector<32x8xf32>
    %39 = tpu.matmul %38, %35, %cst_10 {dimension_numbers = #tpu.dot_dimension_numbers<[1], [0], [0], [1], [0, 0, 1, 1], [], []>} : vector<32x4xbf16>, vector<4x8xbf16>, vector<32x8xf32> -> vector<32x8xf32>
    %40 = arith.truncf %28 : vector<32x4xf32> to vector<32x4xbf16>
    %cst_11 = arith.constant dense<0.000000e+00> : vector<32x8xf32>
    %41 = tpu.matmul %40, %37, %cst_11 {dimension_numbers = #tpu.dot_dimension_numbers<[1], [0], [0], [1], [0, 0, 1, 1], [], []>} : vector<32x4xbf16>, vector<4x8xbf16>, vector<32x8xf32> -> vector<32x8xf32>
    %42 = arith.addf %39, %41 : vector<32x8xf32>
    %43 = vector.extract_strided_slice %42 {offsets = [0, 0], sizes = [32, 4], strides = [1, 1]} : vector<32x8xf32> to vector<32x4xf32>
    %44 = math.tanh %43 : vector<32x4xf32>
    %45 = vector.extract_strided_slice %42 {offsets = [0, 4], sizes = [32, 4], strides = [1, 1]} : vector<32x8xf32> to vector<32x4xf32>
    %46 = arith.negf %45 : vector<32x4xf32>
    %47 = math.exp %46 : vector<32x4xf32>
    %cst_12 = arith.constant 1.000000e+00 : f32
    %48 = vector.broadcast %cst_12 : f32 to vector<32x4xf32>
    %49 = arith.addf %48, %47 : vector<32x4xf32>
    %50 = arith.divf %48, %49 : vector<32x4xf32>
    %51 = arith.mulf %44, %50 : vector<32x4xf32>
    %c88 = arith.constant 88 : index
    %c0_13 = arith.constant 0 : index
    %52 = vector.load %arg0[%c88, %c0_13] : memref<128x128xf32, #tpu.memory_space<vmem>>, vector<4x8xf32>
    %53 = arith.truncf %52 : vector<4x8xf32> to vector<4x8xbf16>
    %c92 = arith.constant 92 : index
    %c0_14 = arith.constant 0 : index
    %54 = vector.load %arg0[%c92, %c0_14] : memref<128x128xf32, #tpu.memory_space<vmem>>, vector<1x8xf32>
    %55 = arith.truncf %51 : vector<32x4xf32> to vector<32x4xbf16>
    %cst_15 = arith.constant dense<0.000000e+00> : vector<32x8xf32>
    %56 = tpu.matmul %55, %53, %cst_15 {dimension_numbers = #tpu.dot_dimension_numbers<[1], [0], [0], [1], [0, 0, 1, 1], [], []>} : vector<32x4xbf16>, vector<4x8xbf16>, vector<32x8xf32> -> vector<32x8xf32>
    %57 = arith.addf %10, %56 : vector<32x8xf32>
    %58 = vector.broadcast %54 : vector<1x8xf32> to vector<32x8xf32>
    %59 = arith.addf %57, %58 : vector<32x8xf32>
    %60 = vector.extract_strided_slice %59 {offsets = [0, 0], sizes = [32, 4], strides = [1, 1]} : vector<32x8xf32> to vector<32x4xf32>
    %c2_i32 = arith.constant 2 : i32
    %61 = vector.broadcast %c2_i32 : i32 to vector<32x4xi32>
    %62 = arith.cmpi sge, %27, %61 : vector<32x4xi32>
    %c2_i32_16 = arith.constant 2 : i32
    %63 = tpu.dynamic_rotate %60 by %c2_i32_16 dim 0 : vector<32x4xf32>, i32 -> vector<32x4xf32>
    %cst_17 = arith.constant 0.000000e+00 : f32
    %64 = vector.broadcast %cst_17 : f32 to vector<32x4xf32>
    %65 = arith.select %62, %63, %64 : vector<32x4xi1>, vector<32x4xf32>
    %c48 = arith.constant 48 : index
    %c0_18 = arith.constant 0 : index
    %66 = vector.load %arg0[%c48, %c0_18] : memref<128x128xf32, #tpu.memory_space<vmem>>, vector<4x8xf32>
    %67 = arith.truncf %66 : vector<4x8xf32> to vector<4x8xbf16>
    %c72 = arith.constant 72 : index
    %c0_19 = arith.constant 0 : index
    %68 = vector.load %arg0[%c72, %c0_19] : memref<128x128xf32, #tpu.memory_space<vmem>>, vector<4x8xf32>
    %69 = arith.truncf %68 : vector<4x8xf32> to vector<4x8xbf16>
    %70 = arith.truncf %65 : vector<32x4xf32> to vector<32x4xbf16>
    %cst_20 = arith.constant dense<0.000000e+00> : vector<32x8xf32>
    %71 = tpu.matmul %70, %67, %cst_20 {dimension_numbers = #tpu.dot_dimension_numbers<[1], [0], [0], [1], [0, 0, 1, 1], [], []>} : vector<32x4xbf16>, vector<4x8xbf16>, vector<32x8xf32> -> vector<32x8xf32>
    %72 = arith.truncf %60 : vector<32x4xf32> to vector<32x4xbf16>
    %cst_21 = arith.constant dense<0.000000e+00> : vector<32x8xf32>
    %73 = tpu.matmul %72, %69, %cst_21 {dimension_numbers = #tpu.dot_dimension_numbers<[1], [0], [0], [1], [0, 0, 1, 1], [], []>} : vector<32x4xbf16>, vector<4x8xbf16>, vector<32x8xf32> -> vector<32x8xf32>
    %74 = arith.addf %71, %73 : vector<32x8xf32>
    %75 = vector.extract_strided_slice %74 {offsets = [0, 0], sizes = [32, 4], strides = [1, 1]} : vector<32x8xf32> to vector<32x4xf32>
    %76 = math.tanh %75 : vector<32x4xf32>
    %77 = vector.extract_strided_slice %74 {offsets = [0, 4], sizes = [32, 4], strides = [1, 1]} : vector<32x8xf32> to vector<32x4xf32>
    %78 = arith.negf %77 : vector<32x4xf32>
    %79 = math.exp %78 : vector<32x4xf32>
    %cst_22 = arith.constant 1.000000e+00 : f32
    %80 = vector.broadcast %cst_22 : f32 to vector<32x4xf32>
    %81 = arith.addf %80, %79 : vector<32x4xf32>
    %82 = arith.divf %80, %81 : vector<32x4xf32>
    %83 = arith.mulf %76, %82 : vector<32x4xf32>
    %c96 = arith.constant 96 : index
    %c0_23 = arith.constant 0 : index
    %84 = vector.load %arg0[%c96, %c0_23] : memref<128x128xf32, #tpu.memory_space<vmem>>, vector<4x8xf32>
    %85 = arith.truncf %84 : vector<4x8xf32> to vector<4x8xbf16>
    %c100 = arith.constant 100 : index
    %c0_24 = arith.constant 0 : index
    %86 = vector.load %arg0[%c100, %c0_24] : memref<128x128xf32, #tpu.memory_space<vmem>>, vector<1x8xf32>
    %87 = arith.truncf %83 : vector<32x4xf32> to vector<32x4xbf16>
    %cst_25 = arith.constant dense<0.000000e+00> : vector<32x8xf32>
    %88 = tpu.matmul %87, %85, %cst_25 {dimension_numbers = #tpu.dot_dimension_numbers<[1], [0], [0], [1], [0, 0, 1, 1], [], []>} : vector<32x4xbf16>, vector<4x8xbf16>, vector<32x8xf32> -> vector<32x8xf32>
    %89 = arith.addf %59, %88 : vector<32x8xf32>
    %90 = vector.broadcast %86 : vector<1x8xf32> to vector<32x8xf32>
    %91 = arith.addf %89, %90 : vector<32x8xf32>
    %92 = vector.extract_strided_slice %91 {offsets = [0, 0], sizes = [32, 4], strides = [1, 1]} : vector<32x8xf32> to vector<32x4xf32>
    %c4_i32 = arith.constant 4 : i32
    %93 = vector.broadcast %c4_i32 : i32 to vector<32x4xi32>
    %94 = arith.cmpi sge, %27, %93 : vector<32x4xi32>
    %c4_i32_26 = arith.constant 4 : i32
    %95 = tpu.dynamic_rotate %92 by %c4_i32_26 dim 0 : vector<32x4xf32>, i32 -> vector<32x4xf32>
    %cst_27 = arith.constant 0.000000e+00 : f32
    %96 = vector.broadcast %cst_27 : f32 to vector<32x4xf32>
    %97 = arith.select %94, %95, %96 : vector<32x4xi1>, vector<32x4xf32>
    %c56 = arith.constant 56 : index
    %c0_28 = arith.constant 0 : index
    %98 = vector.load %arg0[%c56, %c0_28] : memref<128x128xf32, #tpu.memory_space<vmem>>, vector<4x8xf32>
    %99 = arith.truncf %98 : vector<4x8xf32> to vector<4x8xbf16>
    %c80 = arith.constant 80 : index
    %c0_29 = arith.constant 0 : index
    %100 = vector.load %arg0[%c80, %c0_29] : memref<128x128xf32, #tpu.memory_space<vmem>>, vector<4x8xf32>
    %101 = arith.truncf %100 : vector<4x8xf32> to vector<4x8xbf16>
    %102 = arith.truncf %97 : vector<32x4xf32> to vector<32x4xbf16>
    %cst_30 = arith.constant dense<0.000000e+00> : vector<32x8xf32>
    %103 = tpu.matmul %102, %99, %cst_30 {dimension_numbers = #tpu.dot_dimension_numbers<[1], [0], [0], [1], [0, 0, 1, 1], [], []>} : vector<32x4xbf16>, vector<4x8xbf16>, vector<32x8xf32> -> vector<32x8xf32>
    %104 = arith.truncf %92 : vector<32x4xf32> to vector<32x4xbf16>
    %cst_31 = arith.constant dense<0.000000e+00> : vector<32x8xf32>
    %105 = tpu.matmul %104, %101, %cst_31 {dimension_numbers = #tpu.dot_dimension_numbers<[1], [0], [0], [1], [0, 0, 1, 1], [], []>} : vector<32x4xbf16>, vector<4x8xbf16>, vector<32x8xf32> -> vector<32x8xf32>
    %106 = arith.addf %103, %105 : vector<32x8xf32>
    %107 = vector.extract_strided_slice %106 {offsets = [0, 0], sizes = [32, 4], strides = [1, 1]} : vector<32x8xf32> to vector<32x4xf32>
    %108 = math.tanh %107 : vector<32x4xf32>
    %109 = vector.extract_strided_slice %106 {offsets = [0, 4], sizes = [32, 4], strides = [1, 1]} : vector<32x8xf32> to vector<32x4xf32>
    %110 = arith.negf %109 : vector<32x4xf32>
    %111 = math.exp %110 : vector<32x4xf32>
    %cst_32 = arith.constant 1.000000e+00 : f32
    %112 = vector.broadcast %cst_32 : f32 to vector<32x4xf32>
    %113 = arith.addf %112, %111 : vector<32x4xf32>
    %114 = arith.divf %112, %113 : vector<32x4xf32>
    %115 = arith.mulf %108, %114 : vector<32x4xf32>
    %c104 = arith.constant 104 : index
    %c0_33 = arith.constant 0 : index
    %116 = vector.load %arg0[%c104, %c0_33] : memref<128x128xf32, #tpu.memory_space<vmem>>, vector<4x8xf32>
    %117 = arith.truncf %116 : vector<4x8xf32> to vector<4x8xbf16>
    %c108 = arith.constant 108 : index
    %c0_34 = arith.constant 0 : index
    %118 = vector.load %arg0[%c108, %c0_34] : memref<128x128xf32, #tpu.memory_space<vmem>>, vector<1x8xf32>
    %119 = arith.truncf %115 : vector<32x4xf32> to vector<32x4xbf16>
    %cst_35 = arith.constant dense<0.000000e+00> : vector<32x8xf32>
    %120 = tpu.matmul %119, %117, %cst_35 {dimension_numbers = #tpu.dot_dimension_numbers<[1], [0], [0], [1], [0, 0, 1, 1], [], []>} : vector<32x4xbf16>, vector<4x8xbf16>, vector<32x8xf32> -> vector<32x8xf32>
    %121 = arith.addf %91, %120 : vector<32x8xf32>
    %122 = vector.broadcast %118 : vector<1x8xf32> to vector<32x8xf32>
    %123 = arith.addf %121, %122 : vector<32x8xf32>
    %124 = vector.extract_strided_slice %123 {offsets = [0, 4], sizes = [32, 4], strides = [1, 1]} : vector<32x8xf32> to vector<32x4xf32>
    %cst_36 = arith.constant 0.000000e+00 : f32
    %125 = vector.broadcast %cst_36 : f32 to vector<32x4xf32>
    %126 = arith.maximumf %124, %125 : vector<32x4xf32>
    %c112 = arith.constant 112 : index
    %c0_37 = arith.constant 0 : index
    %127 = vector.load %arg0[%c112, %c0_37] : memref<128x128xf32, #tpu.memory_space<vmem>>, vector<4x4xf32>
    %128 = arith.truncf %127 : vector<4x4xf32> to vector<4x4xbf16>
    %c116 = arith.constant 116 : index
    %c0_38 = arith.constant 0 : index
    %129 = vector.load %arg0[%c116, %c0_38] : memref<128x128xf32, #tpu.memory_space<vmem>>, vector<1x4xf32>
    %130 = arith.truncf %126 : vector<32x4xf32> to vector<32x4xbf16>
    %cst_39 = arith.constant dense<0.000000e+00> : vector<32x4xf32>
    %131 = tpu.matmul %130, %128, %cst_39 {dimension_numbers = #tpu.dot_dimension_numbers<[1], [0], [0], [1], [0, 0, 1, 1], [], []>} : vector<32x4xbf16>, vector<4x4xbf16>, vector<32x4xf32> -> vector<32x4xf32>
    %132 = vector.broadcast %129 : vector<1x4xf32> to vector<32x4xf32>
    %133 = arith.addf %131, %132 : vector<32x4xf32>
    %cst_40 = arith.constant 0.000000e+00 : f32
    %134 = vector.broadcast %cst_40 : f32 to vector<32x4xf32>
    %135 = arith.maximumf %133, %134 : vector<32x4xf32>
    %c120 = arith.constant 120 : index
    %c0_41 = arith.constant 0 : index
    %136 = vector.load %arg0[%c120, %c0_41] : memref<128x128xf32, #tpu.memory_space<vmem>>, vector<4x128xf32>
    %137 = arith.truncf %136 : vector<4x128xf32> to vector<4x128xbf16>
    %c124 = arith.constant 124 : index
    %c0_42 = arith.constant 0 : index
    %138 = vector.load %arg0[%c124, %c0_42] : memref<128x128xf32, #tpu.memory_space<vmem>>, vector<1x128xf32>
    %139 = arith.truncf %135 : vector<32x4xf32> to vector<32x4xbf16>
    %cst_43 = arith.constant dense<0.000000e+00> : vector<32x128xf32>
    %140 = tpu.matmul %139, %137, %cst_43 {dimension_numbers = #tpu.dot_dimension_numbers<[1], [0], [0], [1], [0, 0, 1, 1], [], []>} : vector<32x4xbf16>, vector<4x128xbf16>, vector<32x128xf32> -> vector<32x128xf32>
    %141 = vector.broadcast %138 : vector<1x128xf32> to vector<32x128xf32>
    %142 = arith.addf %140, %141 : vector<32x128xf32>
    %c0_44 = arith.constant 0 : index
    %c0_45 = arith.constant 0 : index
    %143 = vector.load %arg1[%c0_44, %c0_45] : memref<32x128xf32, #tpu.memory_space<vmem>>, vector<32x128xf32>
    tpu.vector_store %arg1[%c0_44, %c0_45], %142 {strides = array<i32>} : memref<32x128xf32, #tpu.memory_space<vmem>>, vector<32x128xf32>,
    return
  }
}

</mosaic_0001>

<bundles_post_ra>
// kernel: tpu_custom_call.1
= control target key start
LH: loop header
LB: loop body
LE: loop exit
PB: predicated region body
PF: predicated region fallthrough
CT: control target
= control target key end

     0   :  { %6 = vsyncpa [#allocation3], 0  ;;  %s1642_s0 = inlined_call_operand.hbm [shape: f32[128,128], index: 0, kind: input, shape index: {}]   ;;  %s1643_s1 = inlined_call_operand.hbm [shape: f32[32,128], index: 1, kind: output, shape index: {}]  }
   0x1   :  { %7 = vsyncpa [#allocation4], 0  ;;  %s1444_s6 = smov [#allocation2]   ;;  %s1396_s10 = scalar_lea.hbm %s1642_s0, 2048 }
   0x2   :  { %s13_s7 = sshll.u32 %s1444_s6, 4  ;;  %p1397_p0 = scmp.ne.s32.totalorder %s1642_s0, %s1396_s10  ;;  %s14_s7 = int_to_ptr.vmem [resolvable:$true] %s13_s7 }
   0x3   :  { %p1400_p1 = scmp.lt.u32.totalorder %s1396_s10, %s1642_s0 }
   0x5   :  { %p1402_p2 = pnand %p1400_p1, %p1397_p0 }
   0x7   :  { %1405 = shalt.err (!%p1402_p2)
}
   0x8   :  { %s1406_s15 = scalar_lea.vmem %s14_s7, 2048  ;;  %p1411_p4 = scmp.lt.s32.totalorder %s14_s7, %s14_s7 }
   0x9   :  { %p1407_p3 = scmp.ne.s32.totalorder %s14_s7, %s1406_s15  ;;  %p1412_p5 = scmp.lt.s32.totalorder %s1406_s15, %s1406_s15 }
   0xb   :  { %p1413_p6 = por %p1412_p5, %p1411_p4 }
   0xd   :  { %p1414_p7 = pnand %p1413_p6, %p1407_p3 }
   0xf   :  { %1417 = shalt.err (!%p1414_p7)
}
  0x10   :  { %s1445_s16 = smov 128   ;;  %s1446_s17 = smov 8  }
  0x11   :  { %19 = dma.hbm_to_vmem [thread:$0]  %s1642_s0, 2048, %s14_s7, [#allocation3], %s1445_s16, %s1445_s16, %s1446_s17  }
  0x12   :  { %1440 = dma.done.wait [#allocation3], 2048  }
  0x13   :  { %1441 = vsyncadd [#allocation3], 4294965248  ;;  %v1447_v0 = vmov 0   ;;  %v26_v1 = vld [vmem:[#allocation2 + $0x10] sm:$0xff]  ;;  %v24_v2 = vld [vmem:[#allocation2] sm:$0xff]  ;;  %vm69_vm0 = vcmask 1043456   ;;  %v32_v8 = vlaneseq }
  0x14   :  { %1323 = vset.pattern.permute.xlu1 %v1447_v0  ;;  %1322 = vset.pattern.permute.xlu0 %v1447_v0  ;;  %v27_v3 = vld [vmem:[#allocation2 + $0x18] sm:$0xff]  ;;  %v25_v4 = vld [vmem:[#allocation2 + $0x8] sm:$0xff]  ;;  %v60_v5 = vld [vmem:[#allocation2 + $0x20] sm:$0xff]  ;;  %vm62_vm5 = vcmask 64512   ;;  %v1448_v14 = vmov 0.0   ;;  %vm207_vm6 = vcmask 1041408  }
  0x15   :  { %41 = vperm.xlu1 %1323, %v26_v1   ;;  %35 = vperm.xlu0 %1322, %v24_v2   ;;  %v61_v6 = vpack.c.bf16 %v60_v5, %v60_v5  ;;  %v33_v9 = vand.u32 127, %v32_v8  ;;  %v194_v21 = vld [vmem:[#allocation2 + $0x40] sm:$0xf]  ;;  %v192_v24 = vld [vmem:[#allocation2 + $0x28] sm:$0xf]  ;;  %v1479_v26 = vshrl.u32 %v32_v8, 7 }
  0x16   :  { %v195_v22 = vpack.c.bf16 %v194_v21, %v194_v21  ;;  %v193_v25 = vpack.c.bf16 %v192_v24, %v192_v24  ;;  %vm200_vm8 = vcmask 31744   ;;  %v366_v60 = vld [vmem:[#allocation2 + $0x58] sm:$0xf]  ;;  %s1449_s0 = smov 124   ;;  %s1450_s20 = smov [#allocation5]  }
  0x17   :  { %1303 = vmatprep.subr.msk.bf16.mxu0 %vm69_vm0, %v61_v6  ;;  %v71_v7 = vsel %vm69_vm0, %v61_v6, 0  ;;  %v125_v27 = vadd.s32 16, %v1479_v26  ;;  %v1483_v28 = vand.u32 15, %v1479_v26  ;;  %vm183_vm7 = vcmp.lt.s32.totalorder %v1479_v26, 1  ;;  %s1126_s21 = sshll.u32 %s1450_s20, 4  ;;  %s1127_s21 = int_to_ptr.vmem [resolvable:$true] %s1126_s21 }
  0x18   :  { %1220 = vmatpush3.bf16.msra.mxu0 %v71_v7  ;;  %1304 = vmatprep.subr.msk.bf16.mxu1 %vm207_vm6, %v195_v22  ;;  %v209_v23 = vsel %vm207_vm6, %v195_v22, 0  ;;  %v267_v42 = vsel %vm207_vm6, %v193_v25, 0  ;;  %v367_v62 = vpack.c.bf16 %v366_v60, %v366_v60  ;;  %v460_v22 = vld [vmem:[#allocation2 + $0x48] sm:$0xf]  ;;  %vm449_vm11 = vcmp.lt.s32.totalorder %v1479_v26, 2  ;;  %s1418_s22 = scalar_lea.vmem %s1127_s21, 512  ;;  %p1423_p9 = scmp.lt.s32.totalorder %s1127_s21, %s1127_s21 }
  0x19   :  { %44 = vperm.xlu1 %1323, %v27_v3   ;;  %38 = vperm.xlu0 %1322, %v25_v4   ;;  %v1487_v30 = vand.u32 15, %v125_v27  ;;  %vm175_vm9 = vcmp.ge.s32.totalorder %v1483_v28, 1  ;;  %vm441_vm12 = vcmp.ge.s32.totalorder %v1483_v28, 2  ;;  %vm713_vm14 = vcmp.lt.s32.totalorder %v1479_v26, 4  ;;  %v894_v26 = vld [vmem:[#allocation2 + $0x68] sm:$0xf]  ;;  %p1419_p8 = scmp.ne.s32.totalorder %s1127_s21, %s1418_s22  ;;  %p1424_p10 = scmp.lt.s32.totalorder %s1418_s22, %s1418_s22 }
  0x1a   :  { %1226 = vmatpush3.bf16.msra.mxu1 %v209_v23  ;;  %1306 = vmatprep.subr.msk.bf16.mxu0 %vm207_vm6, %v367_v62  ;;  %v378_v3 = vsel %vm207_vm6, %v367_v62, 0  ;;  %v461_v23 = vpack.c.bf16 %v460_v22, %v460_v22  ;;  %vm705_vm15 = vcmp.ge.s32.totalorder %v1483_v28, 4 }
  0x1b   :  { %1305 = vmatprep.subr.msk.bf16.mxu1 %vm207_vm6, %v193_v25  ;;  %vm177_vm10 = vcmp.ge.s32.totalorder %v1487_v30, 1  ;;  %v458_v25 = vld [vmem:[#allocation2 + $0x30] sm:$0xf]  ;;  %vm443_vm13 = vcmp.ge.s32.totalorder %v1487_v30, 2  ;;  %vm707_vm0 = vcmp.ge.s32.totalorder %v1487_v30, 4  ;;  %p1425_p11 = por %p1424_p10, %p1423_p9 }
  0x1c   :  { %v473_v24 = vsel %vm207_vm6, %v461_v23, 0  ;;  %v459_v27 = vpack.c.bf16 %v458_v25, %v458_v25 }
  0x1d   :  { %p1426_p12 = pnand %p1425_p11, %p1419_p8 }
  0x94   :  { %v42_v10 = vpop.permute.xlu1 %41  ;;  %v36_v11 = vpop.permute.xlu0 %35 }
  0x95   :  { %vm48_vm1 = vcmp.eq.s32.totalorder %v33_v9, %v42_v10  ;;  %vm46_vm2 = vcmp.eq.s32.totalorder %v33_v9, %v36_v11 }
  0x96   :  { %v1140_v15 = vsel %vm48_vm1, 1.0, %v1448_v14  ;;  %v1138_v16 = vsel %vm46_vm2, 1.0, %v1448_v14 }
  0x98   :  { %v45_v12 = vpop.permute.xlu1 %44  ;;  %v39_v13 = vpop.permute.xlu0 %38 }
  0x99   :  { %vm49_vm3 = vcmp.eq.s32.totalorder %v33_v9, %v45_v12  ;;  %vm47_vm4 = vcmp.eq.s32.totalorder %v33_v9, %v39_v13 }
  0x9a   :  { %v1141_v17 = vsel %vm49_vm3, 1.0, %v1448_v14  ;;  %v1139_v18 = vsel %vm47_vm4, 1.0, %v1448_v14 }
  0x9b   :  { %v59_v19 = vpack.c.bf16 %v1141_v17, %v1140_v15  ;;  %v58_v20 = vpack.c.bf16 %v1139_v18, %v1138_v16 }
  0x9d   :  { %1221 = vmatprep.mubr.msk.bf16.mxu0 %vm62_vm5, %v58_v20 }
  0x9e   :  { %1222 = vmatmul.mubr.msk.bf16.vlgmr.msra.gmra.mrb[0].mxu0 %vm62_vm5, %v59_v19 }
  0x9f   :  { %1238 = vmatpush3.bf16.msra.mxu0 %v378_v3 }
  0xa0   :  { %1307 = vmatprep.subr.msk.bf16.mxu0 %vm207_vm6, %v461_v23 }
 0x171   :  { %v1485_v29 = vpop.f32.mrb[0].mxu0 }
 0x172   :  { %v1489_v31 = vpop.f32.mrb[1].mxu0  ;;  %v181_v34 = vrot.slane %v1485_v29, 7 }
 0x173   :  { %v179_v32 = vrot.slane %v1489_v31, 7  ;;  %v1492_v33 = vpop.f32.mrb[2].mxu0 }
 0x174   :  { %v182_v35 = vrot.slane %v1492_v33, 7  ;;  %v199_v36 = vpack.c.bf16 %v1492_v33, %v1485_v29  ;;  %v1499_v37 = vpop.f32.mrb[3].mxu0 }
 0x175   :  { %v180_v38 = vrot.slane %v1499_v37, 7  ;;  %v198_v39 = vpack.c.bf16 %v1499_v37, %v1489_v31 }
 0x176   :  { %v184_v40 = vsel %vm183_vm7, %v181_v34, %v182_v35  ;;  %v187_v41 = vsel %vm183_vm7, %v182_v35, %v179_v32 }
 0x177   :  { %v185_v43 = vsel %vm183_vm7, %v180_v38, %v181_v34  ;;  %v186_v44 = vsel %vm183_vm7, %v179_v32, %v180_v38  ;;  %1227 = vmatprep.mubr.msk.bf16.mxu1 %vm200_vm8, %v198_v39  ;;  %v188_v45 = vsel %vm175_vm9, %v187_v41, 0.0  ;;  %v1154_v34 = vld [vmem:[#allocation2 + $0x5c] ss:$0 sm:$0xff] }
 0x178   :  { %v190_v46 = vsel %vm177_vm10, %v185_v43, 0.0  ;;  %1228 = vmatmul.mubr.msk.bf16.vlgmr.msra.gmra.mrb[0].mxu1 %vm200_vm8, %v199_v36  ;;  %v196_v47 = vpack.c.bf16 %v186_v44, %v188_v45 }
 0x179   :  { %v197_v48 = vpack.c.bf16 %v184_v40, %v190_v46  ;;  %1232 = vmatpush3.bf16.msra.mxu1 %v267_v42 }
 0x17a   :  { %1233 = vmatprep.mubr.msk.bf16.mxu1 %vm200_vm8, %v196_v47 }
 0x184   :  { %1234 = vmatmul.mubr.msk.bf16.vlgmr.msra.gmra.mrb[0].mxu1 %vm200_vm8, %v197_v48  ;;  %v531_v48 = vsel %vm207_vm6, %v459_v27, 0 }
 0x257   :  { %v1235_v49 = vpop.f32.mrb[0].mxu1 }
 0x258   :  { %v1150_v50 = vmul.f32 -1.442695, %v1235_v49  ;;  %v303_v51 = vpop.f32.mrb[1].mxu1 }
 0x259   :  { %v1148_v52 = vmul.f32 -1.442695, %v303_v51  ;;  %v1236_v53 = vpop.f32.mrb[2].mxu1 }
 0x25a   :  { %1324 = vpow2.f32 %v1150_v50  ;;  %v1151_v54 = vmul.f32 -1.442695, %v1236_v53  ;;  %v306_v55 = vpop.f32.mrb[3].mxu1 }
 0x25b   :  { %1326 = vpow2.f32 %v1148_v52  ;;  %v1149_v56 = vmul.f32 -1.442695, %v306_v55 }
 0x25c   :  { %1328 = vpow2.f32 %v1151_v54 }
 0x25d   :  { %1330 = vpow2.f32 %v1149_v56 }
 0x264   :  { %v1325_v57 = vpop.eup %1324 }
 0x265   :  { %v1327_v58 = vpop.eup %1326  ;;  %v336_v61 = vadd.f32 1.0, %v1325_v57 }
 0x266   :  { %v334_v59 = vadd.f32 1.0, %v1327_v58  ;;  %v1329_v63 = vpop.eup %1328 }
 0x267   :  { %v1331_v0 = vpop.eup %1330  ;;  %v337_v2 = vadd.f32 1.0, %v1329_v63 }
 0x268   :  { %1332 = vrcp.f32 %v334_v59  ;;  %v335_v1 = vadd.f32 1.0, %v1331_v0 }
 0x269   :  { %1334 = vrcp.f32 %v336_v61 }
 0x26a   :  { %1336 = vrcp.f32 %v335_v1 }
 0x26b   :  { %1338 = vrcp.f32 %v337_v2 }
 0x26c   :  { %1340 = vtanh.f32 %v303_v51 }
 0x26d   :  { %1342 = vtanh.f32 %v306_v55 }
 0x26e   :  { %1344 = vtanh.f32 %v1235_v49 }
 0x26f   :  { %1346 = vtanh.f32 %v1236_v53 }
 0x272   :  { %v1333_v4 = vpop.eup %1332 }
 0x273   :  { %350 = vrot.lane.b32.xlu0 %v1333_v4, %s1449_s0  ;;  %v1335_v5 = vpop.eup %1334 }
 0x274   :  { %v1337_v6 = vpop.eup %1336 }
 0x275   :  { %352 = vrot.lane.b32.xlu1 %v1337_v6, %s1449_s0  ;;  %v1339_v7 = vpop.eup %1338 }
 0x276   :  { %v1341_v9 = vpop.eup %1340 }
 0x277   :  { %354 = vrot.lane.b32.xlu0 %v1335_v5, %s1449_s0  ;;  %v1343_v10 = vpop.eup %1342  ;;  %v630_v5 = vld [vmem:[#allocation2 + $0x60] sm:$0xf] }
 0x278   :  { %v1345_v15 = vpop.eup %1344 }
 0x279   :  { %356 = vrot.lane.b32.xlu1 %v1339_v7, %s1449_s0  ;;  %v1347_v17 = vpop.eup %1346  ;;  %v631_v7 = vpack.c.bf16 %v630_v5, %v630_v5 }
 0x27b   :  { %1309 = vmatprep.subr.msk.bf16.mxu1 %vm207_vm6, %v631_v7 }
 0x2e5   :  { %v351_v8 = vpop.permute.xlu0 %350 }
 0x2e6   :  { %v362_v12 = vmul.f32 %v1341_v9, %v351_v8 }
 0x2e7   :  { %v353_v11 = vpop.permute.xlu1 %352 }
 0x2e8   :  { %v363_v13 = vmul.f32 %v1343_v10, %v353_v11 }
 0x2e9   :  { %v355_v14 = vpop.permute.xlu0 %354 }
 0x2ea   :  { %v369_v16 = vpack.c.bf16 %v363_v13, %v362_v12  ;;  %v364_v19 = vmul.f32 %v1345_v15, %v355_v14  ;;  %v642_v12 = vsel %vm207_vm6, %v631_v7, 0 }
 0x2eb   :  { %v357_v18 = vpop.permute.xlu1 %356  ;;  %1256 = vmatpush3.bf16.msra.mxu1 %v642_v12 }
 0x2ec   :  { %v365_v20 = vmul.f32 %v1347_v17, %v357_v18  ;;  %1239 = vmatprep.mubr.msk.bf16.mxu0 %vm200_vm8, %v369_v16 }
 0x2ee   :  { %v370_v21 = vpack.c.bf16 %v365_v20, %v364_v19 }
 0x2f0   :  { %1240 = vmatmul.mubr.msk.bf16.vlgmr.msra.gmra.mrb[4].mxu0 %vm200_vm8, %v370_v21 }
 0x2f1   :  { %1244 = vmatpush3.bf16.msra.mxu0 %v473_v24 }
 0x2f2   :  { %1308 = vmatprep.subr.msk.bf16.mxu0 %vm207_vm6, %v459_v27 }
 0x3c3   :  { %v1241_v32 = vpop.f32.mrb[4].mxu0 }
 0x3c4   :  { %v431_v35 = vadd.f32 %v1241_v32, %v1485_v29  ;;  %v414_v36 = vpop.f32.mrb[5].mxu0 }
 0x3c5   :  { %v429_v38 = vadd.f32 %v414_v36, %v1489_v31  ;;  %v1242_v39 = vpop.f32.mrb[6].mxu0 }
 0x3c6   :  { %v432_v40 = vadd.f32 %v1242_v39, %v1492_v33  ;;  %v417_v41 = vpop.f32.mrb[7].mxu0  ;;  %v1534_v29 = vadd.f32 %v1154_v34, %v431_v35 }
 0x3c7   :  { %v1525_v42 = vadd.f32 %v1154_v34, %v429_v38  ;;  %v430_v43 = vadd.f32 %v417_v41, %v1499_v37  ;;  %v724_v38 = vld [vmem:[#allocation2 + $0x50] sm:$0xf]  ;;  %v722_v41 = vld [vmem:[#allocation2 + $0x38] sm:$0xf] }
 0x3c8   :  { %v1528_v44 = vadd.f32 %v1154_v34, %v432_v40  ;;  %v447_v53 = vrot.slane %v1534_v29, 6  ;;  %v725_v39 = vpack.c.bf16 %v724_v38, %v724_v38 }
 0x3c9   :  { %v445_v45 = vrot.slane %v1525_v42, 6  ;;  %v1532_v46 = vadd.f32 %v1154_v34, %v430_v43  ;;  %v723_v43 = vpack.c.bf16 %v722_v41, %v722_v41 }
 0x3ca   :  { %v448_v31 = vrot.slane %v1528_v44, 6  ;;  %v465_v37 = vpack.c.bf16 %v1528_v44, %v1534_v29  ;;  %1310 = vmatprep.subr.msk.bf16.mxu1 %vm207_vm6, %v725_v39  ;;  %v737_v40 = vsel %vm207_vm6, %v725_v39, 0 }
 0x3cb   :  { %v446_v33 = vrot.slane %v1532_v46, 6  ;;  %v464_v47 = vpack.c.bf16 %v1532_v46, %v1525_v42 }
 0x3cc   :  { %v453_v49 = vsel %vm449_vm11, %v448_v31, %v445_v45  ;;  %v450_v56 = vsel %vm449_vm11, %v447_v53, %v448_v31  ;;  %v1165_v31 = vld [vmem:[#allocation2 + $0x64] ss:$0 sm:$0xff] }
 0x3cd   :  { %1245 = vmatprep.mubr.msk.bf16.mxu0 %vm200_vm8, %v464_v47  ;;  %v452_v50 = vsel %vm449_vm11, %v445_v45, %v446_v33  ;;  %v454_v51 = vsel %vm441_vm12, %v453_v49, 0.0  ;;  %v451_v54 = vsel %vm449_vm11, %v446_v33, %v447_v53 }
 0x3ce   :  { %1246 = vmatmul.mubr.msk.bf16.vlgmr.msra.gmra.mrb[8].mxu0 %vm200_vm8, %v465_v37  ;;  %v462_v52 = vpack.c.bf16 %v452_v50, %v454_v51  ;;  %v456_v55 = vsel %vm443_vm13, %v451_v54, 0.0 }
 0x3cf   :  { %1250 = vmatpush3.bf16.msra.mxu0 %v531_v48  ;;  %v463_v57 = vpack.c.bf16 %v450_v56, %v456_v55 }
 0x3d0   :  { %1251 = vmatprep.mubr.msk.bf16.mxu0 %vm200_vm8, %v462_v52 }
 0x3da   :  { %1252 = vmatmul.mubr.msk.bf16.vlgmr.msra.gmra.mrb[8].mxu0 %vm200_vm8, %v463_v57  ;;  %v795_v57 = vsel %vm207_vm6, %v723_v43, 0 }
 0x4ad   :  { %v1253_v58 = vpop.f32.mrb[8].mxu0 }
 0x4ae   :  { %v1161_v59 = vmul.f32 -1.442695, %v1253_v58  ;;  %v567_v60 = vpop.f32.mrb[9].mxu0 }
 0x4af   :  { %v1159_v61 = vmul.f32 -1.442695, %v567_v60  ;;  %v1254_v62 = vpop.f32.mrb[10].mxu0 }
 0x4b0   :  { %1348 = vpow2.f32 %v1161_v59  ;;  %v1162_v63 = vmul.f32 -1.442695, %v1254_v62  ;;  %v570_v0 = vpop.f32.mrb[11].mxu0 }
 0x4b1   :  { %1350 = vpow2.f32 %v1159_v61  ;;  %v1160_v1 = vmul.f32 -1.442695, %v570_v0 }
 0x4b2   :  { %1352 = vpow2.f32 %v1162_v63 }
 0x4b3   :  { %1354 = vpow2.f32 %v1160_v1 }
 0x4ba   :  { %v1349_v2 = vpop.eup %1348 }
 0x4bb   :  { %v1351_v3 = vpop.eup %1350  ;;  %v600_v6 = vadd.f32 1.0, %v1349_v2 }
 0x4bc   :  { %v598_v4 = vadd.f32 1.0, %v1351_v3  ;;  %v1353_v8 = vpop.eup %1352 }
 0x4bd   :  { %v1355_v9 = vpop.eup %1354  ;;  %v601_v11 = vadd.f32 1.0, %v1353_v8 }
 0x4be   :  { %1356 = vrcp.f32 %v598_v4  ;;  %v599_v10 = vadd.f32 1.0, %v1355_v9 }
 0x4bf   :  { %1358 = vrcp.f32 %v600_v6 }
 0x4c0   :  { %1360 = vrcp.f32 %v599_v10 }
 0x4c1   :  { %1362 = vrcp.f32 %v601_v11 }
 0x4c2   :  { %1364 = vtanh.f32 %v567_v60 }
 0x4c3   :  { %1366 = vtanh.f32 %v570_v0 }
 0x4c4   :  { %1368 = vtanh.f32 %v1253_v58 }
 0x4c5   :  { %1370 = vtanh.f32 %v1254_v62 }
 0x4c8   :  { %v1357_v13 = vpop.eup %1356 }
 0x4c9   :  { %614 = vrot.lane.b32.xlu0 %v1357_v13, %s1449_s0  ;;  %v1359_v14 = vpop.eup %1358  ;;  %v895_v13 = vpack.c.bf16 %v894_v26, %v894_v26 }
 0x4ca   :  { %v1361_v15 = vpop.eup %1360 }
 0x4cb   :  { %616 = vrot.lane.b32.xlu1 %v1361_v15, %s1449_s0  ;;  %v1363_v16 = vpop.eup %1362  ;;  %1312 = vmatprep.subr.msk.bf16.mxu0 %vm207_vm6, %v895_v13 }
 0x4cc   :  { %v1365_v18 = vpop.eup %1364 }
 0x4cd   :  { %618 = vrot.lane.b32.xlu0 %v1359_v14, %s1449_s0  ;;  %v1367_v19 = vpop.eup %1366 }
 0x4ce   :  { %v1369_v24 = vpop.eup %1368 }
 0x4cf   :  { %620 = vrot.lane.b32.xlu1 %v1363_v16, %s1449_s0  ;;  %v1371_v27 = vpop.eup %1370 }
 0x53b   :  { %v615_v17 = vpop.permute.xlu0 %614 }
 0x53c   :  { %v626_v21 = vmul.f32 %v1365_v18, %v615_v17  ;;  %v906_v18 = vsel %vm207_vm6, %v895_v13, 0 }
 0x53d   :  { %v617_v20 = vpop.permute.xlu1 %616  ;;  %1274 = vmatpush3.bf16.msra.mxu0 %v906_v18 }
 0x53e   :  { %v627_v22 = vmul.f32 %v1367_v19, %v617_v20 }
 0x53f   :  { %v619_v23 = vpop.permute.xlu0 %618 }
 0x540   :  { %v633_v25 = vpack.c.bf16 %v627_v22, %v626_v21  ;;  %v628_v34 = vmul.f32 %v1369_v24, %v619_v23 }
 0x541   :  { %v621_v32 = vpop.permute.xlu1 %620 }
 0x542   :  { %v629_v35 = vmul.f32 %v1371_v27, %v621_v32  ;;  %1257 = vmatprep.mubr.msk.bf16.mxu1 %vm200_vm8, %v633_v25 }
 0x544   :  { %v634_v36 = vpack.c.bf16 %v629_v35, %v628_v34 }
 0x546   :  { %1258 = vmatmul.mubr.msk.bf16.vlgmr.msra.gmra.mrb[4].mxu1 %vm200_vm8, %v634_v36 }
 0x547   :  { %1262 = vmatpush3.bf16.msra.mxu1 %v737_v40 }
 0x548   :  { %1311 = vmatprep.subr.msk.bf16.mxu1 %vm207_vm6, %v723_v43 }
 0x619   :  { %v1259_v45 = vpop.f32.mrb[4].mxu1 }
 0x61a   :  { %v678_v33 = vpop.f32.mrb[5].mxu1  ;;  %v695_v48 = vadd.f32 %v1259_v45, %v1534_v29 }
 0x61b   :  { %v693_v47 = vadd.f32 %v678_v33, %v1525_v42  ;;  %v1260_v37 = vpop.f32.mrb[6].mxu1 }
 0x61c   :  { %v696_v49 = vadd.f32 %v1260_v37, %v1528_v44  ;;  %v681_v50 = vpop.f32.mrb[7].mxu1  ;;  %v1581_v56 = vadd.f32 %v1165_v31, %v695_v48  ;;  %v1176_v37 = vld [vmem:[#allocation2 + $0x6c] ss:$0 sm:$0xff] }
 0x61d   :  { %v1572_v51 = vadd.f32 %v1165_v31, %v693_v47  ;;  %v694_v52 = vadd.f32 %v681_v50, %v1532_v46 }
 0x61e   :  { %v1575_v53 = vadd.f32 %v1165_v31, %v696_v49  ;;  %v711_v61 = vrot.slane %v1581_v56, 4 }
 0x61f   :  { %v709_v54 = vrot.slane %v1572_v51, 4  ;;  %v1579_v55 = vadd.f32 %v1165_v31, %v694_v52  ;;  %v973_v31 = vld [vmem:[#allocation2 + $0x70] sm:$0xf] }
 0x620   :  { %v712_v42 = vrot.slane %v1575_v53, 4  ;;  %v729_v46 = vpack.c.bf16 %v1575_v53, %v1581_v56  ;;  %v974_v33 = vpack.c.bf16 %v973_v31, %v973_v31 }
 0x621   :  { %v710_v44 = vrot.slane %v1579_v55, 4  ;;  %v728_v29 = vpack.c.bf16 %v1579_v55, %v1572_v51 }
 0x622   :  { %v717_v58 = vsel %vm713_vm14, %v712_v42, %v709_v54  ;;  %v714_v0 = vsel %vm713_vm14, %v711_v61, %v712_v42  ;;  %1313 = vmatprep.subr.msk.bf16.mxu0 %vm207_vm6, %v974_v33  ;;  %v995_v47 = vsel %vm207_vm6, %v974_v33, 0 }
 0x623   :  { %1263 = vmatprep.mubr.msk.bf16.mxu1 %vm200_vm8, %v728_v29  ;;  %v716_v59 = vsel %vm713_vm14, %v709_v54, %v710_v44  ;;  %v718_v60 = vsel %vm705_vm15, %v717_v58, 0.0  ;;  %v715_v62 = vsel %vm713_vm14, %v710_v44, %v711_v61 }
 0x624   :  { %1264 = vmatmul.mubr.msk.bf16.vlgmr.msra.gmra.mrb[8].mxu1 %vm200_vm8, %v729_v46  ;;  %v726_v28 = vpack.c.bf16 %v716_v59, %v718_v60  ;;  %v720_v63 = vsel %vm707_vm0, %v715_v62, 0.0 }
 0x625   :  { %1268 = vmatpush3.bf16.msra.mxu1 %v795_v57  ;;  %v727_v1 = vpack.c.bf16 %v714_v0, %v720_v63 }
 0x626   :  { %1269 = vmatprep.mubr.msk.bf16.mxu1 %vm200_vm8, %v726_v28 }
 0x630   :  { %1270 = vmatmul.mubr.msk.bf16.vlgmr.msra.gmra.mrb[8].mxu1 %vm200_vm8, %v727_v1 }
 0x703   :  { %v1271_v2 = vpop.f32.mrb[8].mxu1 }
 0x704   :  { %v1172_v3 = vmul.f32 -1.442695, %v1271_v2  ;;  %v831_v4 = vpop.f32.mrb[9].mxu1 }
 0x705   :  { %v1170_v5 = vmul.f32 -1.442695, %v831_v4  ;;  %v1272_v6 = vpop.f32.mrb[10].mxu1 }
 0x706   :  { %1372 = vpow2.f32 %v1172_v3  ;;  %v1173_v7 = vmul.f32 -1.442695, %v1272_v6  ;;  %v834_v8 = vpop.f32.mrb[11].mxu1 }
 0x707   :  { %1374 = vpow2.f32 %v1170_v5  ;;  %v1171_v30 = vmul.f32 -1.442695, %v834_v8 }
 0x708   :  { %1376 = vpow2.f32 %v1173_v7 }
 0x709   :  { %1378 = vpow2.f32 %v1171_v30 }
 0x710   :  { %v1373_v9 = vpop.eup %1372 }
 0x711   :  { %v1375_v10 = vpop.eup %1374  ;;  %v864_v12 = vadd.f32 1.0, %v1373_v9 }
 0x712   :  { %v862_v11 = vadd.f32 1.0, %v1375_v10  ;;  %v1377_v14 = vpop.eup %1376 }
 0x713   :  { %v1379_v15 = vpop.eup %1378  ;;  %v865_v17 = vadd.f32 1.0, %v1377_v14 }
 0x714   :  { %1380 = vrcp.f32 %v862_v11  ;;  %v863_v16 = vadd.f32 1.0, %v1379_v15  ;;  %v1180_v15 = vld [vmem:[#allocation2 + $0x7c] ss:$0 sm:$0xff] }
 0x715   :  { %1382 = vrcp.f32 %v864_v12 }
 0x716   :  { %1384 = vrcp.f32 %v863_v16 }
 0x717   :  { %1386 = vrcp.f32 %v865_v17 }
 0x718   :  { %1388 = vtanh.f32 %v831_v4 }
 0x719   :  { %1390 = vtanh.f32 %v834_v8 }
 0x71a   :  { %1392 = vtanh.f32 %v1271_v2  ;;  %v1177_v2 = vld [vmem:[#allocation2 + $0x74] ss:$0 sm:$0xff] }
 0x71b   :  { %1394 = vtanh.f32 %v1272_v6 }
 0x71e   :  { %v1381_v19 = vpop.eup %1380 }
 0x71f   :  { %878 = vrot.lane.b32.xlu0 %v1381_v19, %s1449_s0  ;;  %v1383_v20 = vpop.eup %1382 }
 0x720   :  { %v1385_v21 = vpop.eup %1384 }
 0x721   :  { %880 = vrot.lane.b32.xlu1 %v1385_v21, %s1449_s0  ;;  %v1387_v22 = vpop.eup %1386 }
 0x722   :  { %v1389_v24 = vpop.eup %1388 }
 0x723   :  { %882 = vrot.lane.b32.xlu0 %v1383_v20, %s1449_s0  ;;  %v1391_v25 = vpop.eup %1390 }
 0x724   :  { %v1393_v36 = vpop.eup %1392 }
 0x725   :  { %884 = vrot.lane.b32.xlu1 %v1387_v22, %s1449_s0  ;;  %v1395_v39 = vpop.eup %1394 }
 0x791   :  { %v879_v23 = vpop.permute.xlu0 %878 }
 0x792   :  { %v890_v32 = vmul.f32 %v1389_v24, %v879_v23 }
 0x793   :  { %v881_v27 = vpop.permute.xlu1 %880 }
 0x794   :  { %v891_v34 = vmul.f32 %v1391_v25, %v881_v27 }
 0x795   :  { %v883_v35 = vpop.permute.xlu0 %882 }
 0x796   :  { %v897_v38 = vpack.c.bf16 %v891_v34, %v890_v32  ;;  %v892_v41 = vmul.f32 %v1393_v36, %v883_v35 }
 0x797   :  { %v885_v40 = vpop.permute.xlu1 %884 }
 0x798   :  { %v893_v43 = vmul.f32 %v1395_v39, %v885_v40  ;;  %1275 = vmatprep.mubr.msk.bf16.mxu0 %vm200_vm8, %v897_v38 }
 0x79a   :  { %v898_v45 = vpack.c.bf16 %v893_v43, %v892_v41 }
 0x79c   :  { %1276 = vmatmul.mubr.msk.bf16.vlgmr.msra.gmra.mrb[12].mxu0 %vm200_vm8, %v898_v45 }
 0x79d   :  { %1280 = vmatpush3.bf16.msra.mxu0 %v995_v47 }
 0x86f   :  { %v1277_v48 = vpop.f32.mrb[12].mxu0 }
 0x870   :  { %v959_v49 = vadd.f32 %v1277_v48, %v1581_v56  ;;  %v942_v50 = vpop.f32.mrb[13].mxu0 }
 0x871   :  { %v957_v52 = vadd.f32 %v942_v50, %v1572_v51  ;;  %v1278_v54 = vpop.f32.mrb[14].mxu0 }
 0x872   :  { %v967_v42 = vadd.f32 %v1176_v37, %v959_v49  ;;  %v960_v44 = vadd.f32 %v1278_v54, %v1575_v53  ;;  %v945_v29 = vpop.f32.mrb[15].mxu0  ;;  %v1050_v53 = vld [vmem:[#allocation2 + $0x78] sm:$0xf] }
 0x873   :  { %v965_v46 = vadd.f32 %v1176_v37, %v957_v52  ;;  %v958_v57 = vadd.f32 %v945_v29, %v1579_v55  ;;  %v1051_v55 = vpack.c.bf16 %v1050_v53, %v1050_v53 }
 0x874   :  { %v968_v58 = vadd.f32 %v1176_v37, %v960_v44  ;;  %v971_v60 = vmax.f32 %v967_v42, 0.0 }
 0x875   :  { %v966_v59 = vadd.f32 %v1176_v37, %v958_v57  ;;  %v969_v61 = vmax.f32 %v965_v46, 0.0  ;;  %1314 = vmatprep.subr.msk.bf16.mxu1 %vm207_vm6, %v1051_v55  ;;  %v1066_v1 = vsel %vm207_vm6, %v1051_v55, 0 }
 0x876   :  { %v972_v28 = vmax.f32 %v968_v58, 0.0  ;;  %1286 = vmatpush3.bf16.msra.mxu1 %v1066_v1 }
 0x877   :  { %v970_v62 = vmax.f32 %v966_v59, 0.0 }
 0x878   :  { %v977_v63 = vpack.c.bf16 %v972_v28, %v971_v60 }
 0x879   :  { %v976_v0 = vpack.c.bf16 %v970_v62, %v969_v61 }
 0x87a   :  { %986 = vrot.lane.b32.xlu1 %v977_v63, %s1449_s0 }
 0x87b   :  { %984 = vrot.lane.b32.xlu0 %v976_v0, %s1449_s0 }
 0x8ec   :  { %v987_v56 = vpop.permute.xlu1 %986 }
 0x8ed   :  { %v985_v51 = vpop.permute.xlu0 %984 }
 0x8ee   :  { %1281 = vmatprep.mubr.msk.bf16.mxu0 %vm200_vm8, %v985_v51 }
 0x8ef   :  { %1282 = vmatmul.mubr.msk.bf16.vlgmr.msra.gmra.mrb[16].mxu0 %vm200_vm8, %v987_v56 }
 0x9c2   :  { %v1283_v3 = vpop.f32.mrb[16].mxu0 }
 0x9c3   :  { %v1040_v4 = vadd.f32 %v1283_v3, %v1177_v2  ;;  %v1031_v5 = vpop.f32.mrb[17].mxu0 }
 0x9c4   :  { %v1032_v6 = vadd.f32 %v1177_v2, %v1031_v5  ;;  %v1284_v7 = vpop.f32.mrb[18].mxu0 }
 0x9c5   :  { %v1043_v8 = vadd.f32 %v1284_v7, %v1177_v2  ;;  %v1034_v30 = vpop.f32.mrb[19].mxu0  ;;  %v1048_v10 = vmax.f32 %v1040_v4, 0.0 }
 0x9c6   :  { %v1035_v9 = vadd.f32 %v1177_v2, %v1034_v30  ;;  %v1046_v26 = vmax.f32 %v1032_v6, 0.0 }
 0x9c7   :  { %v1049_v11 = vmax.f32 %v1043_v8, 0.0 }
 0x9c8   :  { %v1047_v12 = vmax.f32 %v1035_v9, 0.0 }
 0x9c9   :  { %v1054_v13 = vpack.c.bf16 %v1049_v11, %v1048_v10 }
 0x9ca   :  { %v1053_v14 = vpack.c.bf16 %v1047_v12, %v1046_v26 }
 0x9cc   :  { %1287 = vmatprep.mubr.msk.bf16.mxu1 %vm200_vm8, %v1053_v14 }
 0x9cd   :  { %1288 = vmatmul.mubr.msk.bf16.vlgmr.msra.gmra.mrb[12].mxu1 %vm200_vm8, %v1054_v13 }
 0xaa0   :  { %v1289_v16 = vpop.f32.mrb[12].mxu1 }
 0xaa1   :  { %v1111_v17 = vadd.f32 %v1289_v16, %v1180_v15  ;;  %v1102_v18 = vpop.f32.mrb[13].mxu1 }
 0xaa2   :  { %v1103_v19 = vadd.f32 %v1180_v15, %v1102_v18  ;;  %v1290_v20 = vpop.f32.mrb[14].mxu1 }
 0xaa3   :  { %1119 = vst [vmem:[#allocation5 + $0x10] sm:$0xff] %v1111_v17  ;;  %v1114_v21 = vadd.f32 %v1290_v20, %v1180_v15  ;;  %v1105_v22 = vpop.f32.mrb[15].mxu1 }
 0xaa4   :  { %1117 = vst [vmem:[#allocation5] sm:$0xff] %v1103_v19  ;;  %v1106_v23 = vadd.f32 %v1180_v15, %v1105_v22 }
 0xaa5   :  { %1120 = vst [vmem:[#allocation5 + $0x18] sm:$0xff] %v1114_v21 }
 0xaa6   :  { %1118 = vst [vmem:[#allocation5 + $0x8] sm:$0xff] %v1106_v23 }
 0xaa7   :  { %1429 = shalt.err (!%p1426_p12)
}
 0xaa8   :  { %s1430_s25 = scalar_lea.hbm %s1643_s1, 512 }
 0xaa9   :  { %p1431_p13 = scmp.ne.s32.totalorder %s1643_s1, %s1430_s25  ;;  %p1434_p0 = scmp.lt.u32.totalorder %s1430_s25, %s1643_s1 }
 0xaab   :  { %p1436_p1 = pnand %p1434_p0, %p1431_p13 }
 0xaad   :  { %1439 = shalt.err (!%p1436_p1)
}
 0xaae   :  { %1132 = dma.vmem_to_hbm [thread:$0]  %s1127_s21, 512, %s1643_s1, [#allocation4], %s1445_s16, %s1445_s16, %s1446_s17  }
 0xaaf   :  { %1442 = dma.done.wait [#allocation4], 512  }
 0xab0   :  { %1443 = vsyncadd [#allocation4], 4294966784 }
 0xab1   :  { %1136 = vsyncpa [#allocation3], 1 }
 0xab2   :  { %1137 = vsyncpa [#allocation4], 1 }

</bundles_post_ra>
